<compile_context>
chip_gen: v5e
topology: v5e:2x2
jax: 0.10.0
libtpu: 0.0.40
codegen_flags: <defaults>
</compile_context>

<pallas_src>
import jax
import jax.numpy as jnp
from jax.experimental import pallas as pl
from jax.experimental.pallas import tpu as pltpu


def _round_up(x: int, m: int) -> int:
    return ((x + m - 1) // m) * m


def _make_acn_kernel(o_pad, h_pad, fh_pad, out_pad, off_w2, off_w3, off_w4, off_b):
    """Build the fused forward kernel for a fixed (padded) geometry."""

    def acn_kernel(x_ref, p_ref, out_ref):
        # Hoisted bias rows -> (1, width) broadcasts over full-lane vregs.
        b1 = p_ref[off_b + 0:off_b + 1, :h_pad]
        b2 = p_ref[off_b + 1:off_b + 2, :h_pad]
        b3 = p_ref[off_b + 2:off_b + 3, :fh_pad]
        b4 = p_ref[off_b + 3:off_b + 4, :out_pad]

        x = x_ref[...]

        # Feature trunk: two Linear+ReLU layers.
        w1 = p_ref[0:o_pad, :h_pad]
        h = jnp.maximum(jnp.dot(x, w1, preferred_element_type=jnp.float32) + b1, 0.0)
        w2 = p_ref[off_w2:off_w2 + h_pad, :h_pad]
        h = jnp.maximum(jnp.dot(h, w2, preferred_element_type=jnp.float32) + b2, 0.0)

        # Fused heads, layer 1: [wp1 | wv1] in one dot, shared ReLU.
        w3 = p_ref[off_w3:off_w3 + h_pad, :fh_pad]
        t = jnp.maximum(jnp.dot(h, w3, preferred_element_type=jnp.float32) + b3, 0.0)

        # Fused heads, layer 2: block-diagonal [wp2 ; wv2] -> policy in lanes
        # [0:A], value in lane A of one lane-dense output slab.
        w4 = p_ref[off_w4:off_w4 + fh_pad, :out_pad]
        out = jnp.dot(t, w4, preferred_element_type=jnp.float32) + b4

        out_ref[...] = out.astype(out_ref.dtype)

    return acn_kernel


def pack_acn_params(params, observation_space, action_space, hidden_size,
                    dtype=jnp.float32):
    """Pack all weights/biases into ONE padded slab (single HBM->VMEM DMA)."""
    O, A, H = observation_space, action_space, hidden_size
    h2 = H // 2

    o_pad = _round_up(O, 128)
    h_pad = _round_up(H, 128)
    fh_pad = _round_up(2 * h2, 128)
    out_pad = _round_up(A + 1, 128)
    width = max(h_pad, fh_pad, out_pad)

    off_w1 = 0
    off_w2 = off_w1 + o_pad
    off_w3 = off_w2 + h_pad
    off_w4 = off_w3 + h_pad
    off_b = off_w4 + fh_pad      # multiple of 128, hence of 8
    rows = off_b + 8             # 4 bias rows + padding to a sublane multiple

    slab = jnp.zeros((rows, width), dtype)

    def put(s, r0, c0, w):
        w = jnp.asarray(w, dtype)
        return s.at[r0:r0 + w.shape[0], c0:c0 + w.shape[1]].set(w)

    # Trunk weights.
    slab = put(slab, off_w1, 0, params["w1"])                      # [O, H]
    slab = put(slab, off_w2, 0, params["w2"])                      # [H, H]
    # Fused head layer 1: policy half -> cols [0:h2], value half -> [h2:2h2].
    slab = put(slab, off_w3, 0, params["wp1"])                     # [H, h2]
    slab = put(slab, off_w3, h2, params["wv1"])                    # [H, h2]
    # Fused head layer 2 (block-diagonal): rows [0:h2] feed policy cols [0:A],
    # rows [h2:2h2] feed value col A. All padding stays zero.
    slab = put(slab, off_w4, 0, params["wp2"])                     # [h2, A]
    slab = put(slab, off_w4 + h2, A, params["wv2"])                # [h2, 1]
    # Bias rows (padding lanes carry zero bias).
    slab = put(slab, off_b + 0, 0, params["b1"].reshape(1, -1))
    slab = put(slab, off_b + 1, 0, params["b2"].reshape(1, -1))
    b3 = jnp.concatenate([params["bp1"].reshape(-1), params["bv1"].reshape(-1)])
    slab = put(slab, off_b + 2, 0, b3.reshape(1, -1))
    b4 = jnp.concatenate([params["bp2"].reshape(-1), params["bv2"].reshape(-1)])
    slab = put(slab, off_b + 3, 0, b4.reshape(1, -1))

    meta = dict(o_pad=o_pad, h_pad=h_pad, fh_pad=fh_pad, out_pad=out_pad,
                width=width, rows=rows, off_w2=off_w2, off_w3=off_w3,
                off_w4=off_w4, off_b=off_b, A=A)
    return slab, meta


def acn_forward(x, slab, meta, *, batch_tile=512):
    """Run the ACN forward pass. Returns (policy_logits [B, A], value [B])."""
    B, O = x.shape
    o_pad, out_pad, A = meta["o_pad"], meta["out_pad"], meta["A"]

    # Batch tiling: sublane-aligned tile, grid over batch ("parallel" axis so
    # v7x can shard it across its 2 TensorCores and the x DMA pipelines).
    b8 = _round_up(max(B, 1), 8)
    tb = min(_round_up(batch_tile, 8), b8)
    b_pad = _round_up(b8, tb)

    # Zero-pad x to (b_pad, o_pad); zero rows/cols are inert and sliced off.
    xp = jnp.zeros((b_pad, o_pad), x.dtype).at[:B, :O].set(x)

    kernel = _make_acn_kernel(
        o_pad, meta["h_pad"], meta["fh_pad"], out_pad,
        meta["off_w2"], meta["off_w3"], meta["off_w4"], meta["off_b"])

    out = pl.pallas_call(
        kernel,
        out_shape=jax.ShapeDtypeStruct((b_pad, out_pad), jnp.float32),
        grid=(b_pad // tb,),
        in_specs=[
            pl.BlockSpec((tb, o_pad), lambda i: (i, 0)),
            # Whole parameter slab, constant block index -> stays VMEM-resident.
            pl.BlockSpec((meta["rows"], meta["width"]), lambda i: (0, 0)),
        ],
        out_specs=pl.BlockSpec((tb, out_pad), lambda i: (i, 0)),
        compiler_params=pltpu.CompilerParams(
            dimension_semantics=("parallel",)),
    )(xp, slab)

    policy = out[:B, :A]
    value = jnp.squeeze(out[:B, A:A + 1], axis=-1)   # matches torch .squeeze() for B > 1
    return policy, value


def init_acn_params(key, observation_space, action_space, hidden_size=128):
    """Deterministic synthetic parameter init (shapes match nn.Linear layers)."""
    h2 = hidden_size // 2
    keys = jax.random.split(key, 12)

    def lin(kw, kb, fan_in, fan_out):
        bound = 1.0 / jnp.sqrt(jnp.float32(fan_in))
        w = jax.random.uniform(kw, (fan_in, fan_out), jnp.float32, -bound, bound)
        b = jax.random.uniform(kb, (fan_out,), jnp.float32, -bound, bound)
        return w, b

    w1, b1 = lin(keys[0], keys[1], observation_space, hidden_size)
    w2, b2 = lin(keys[2], keys[3], hidden_size, hidden_size)
    wp1, bp1 = lin(keys[4], keys[5], hidden_size, h2)
    wp2, bp2 = lin(keys[6], keys[7], h2, action_space)
    wv1, bv1 = lin(keys[8], keys[9], hidden_size, h2)
    wv2, bv2 = lin(keys[10], keys[11], h2, 1)

    return dict(w1=w1, b1=b1, w2=w2, b2=b2,
                wp1=wp1, bp1=bp1, wp2=wp2, bp2=bp2,
                wv1=wv1, bv1=bv1, wv2=wv2, bv2=bv2)


def acn_reference(x, p):
    """Pure-JAX reference for correctness check."""
    h = jax.nn.relu(x @ p["w1"] + p["b1"])
    h = jax.nn.relu(h @ p["w2"] + p["b2"])
    pol = jax.nn.relu(h @ p["wp1"] + p["bp1"]) @ p["wp2"] + p["bp2"]
    val = jax.nn.relu(h @ p["wv1"] + p["bv1"]) @ p["wv2"] + p["bv2"]
    return pol, jnp.squeeze(val, axis=-1)


if __name__ == "__main__":
    key = jax.random.PRNGKey(0)
    k_x, k_p = jax.random.split(key)

    batch = 8
    observation_space = 16
    action_space = 4
    hidden_size = 32

    x = jax.random.normal(k_x, (batch, observation_space), jnp.float32)
    params = init_acn_params(k_p, observation_space, action_space, hidden_size)
    slab, meta = pack_acn_params(params, observation_space, action_space, hidden_size)

    policy, value = acn_forward(x, slab, meta)
    jax.block_until_ready((policy, value))

    pol_ref, val_ref = acn_reference(x, params)
    assert policy.shape == (batch, action_space)
    assert value.shape == (batch,)
    assert jnp.allclose(policy, pol_ref, atol=1e-4, rtol=1e-4)
    assert jnp.allclose(value, val_ref, atol=1e-4, rtol=1e-4)

    print("KERNEL_OK")
</pallas_src>

<mosaic_0001>
module attributes {stable_mosaic.version = 11 : i64} {
  func.func @acn_kernel(%arg0: i32, %arg1: memref<8x128xf32, #tpu.memory_space<vmem>>, %arg2: memref<520x128xf32, #tpu.memory_space<vmem>>, %arg3: memref<8x128xf32, #tpu.memory_space<vmem>>) attributes {dimension_semantics = [#tpu.dimension_semantics<parallel>], iteration_bounds = array<i64: 1>, scalar_prefetch = 0 : i64, scratch_operands = 0 : i64, tpu.core_type = #tpu.core_type<tc>, window_params = [{transform_indices = @transform_0, window_bounds = array<i64: 8, 128>}, {pipeline_mode = #tpu.pipeline_mode<synchronous>, transform_indices = @transform_1, window_bounds = array<i64: 520, 128>}, {transform_indices = @transform_2, window_bounds = array<i64: 8, 128>}]} {
    %c512 = arith.constant 512 : index
    %c0 = arith.constant 0 : index
    %0 = vector.load %arg2[%c512, %c0] : memref<520x128xf32, #tpu.memory_space<vmem>>, vector<1x128xf32>
    %c513 = arith.constant 513 : index
    %c0_0 = arith.constant 0 : index
    %1 = vector.load %arg2[%c513, %c0_0] : memref<520x128xf32, #tpu.memory_space<vmem>>, vector<1x128xf32>
    %c514 = arith.constant 514 : index
    %c0_1 = arith.constant 0 : index
    %2 = vector.load %arg2[%c514, %c0_1] : memref<520x128xf32, #tpu.memory_space<vmem>>, vector<1x128xf32>
    %c515 = arith.constant 515 : index
    %c0_2 = arith.constant 0 : index
    %3 = vector.load %arg2[%c515, %c0_2] : memref<520x128xf32, #tpu.memory_space<vmem>>, vector<1x128xf32>
    %c0_3 = arith.constant 0 : index
    %c0_4 = arith.constant 0 : index
    %4 = vector.load %arg1[%c0_3, %c0_4] : memref<8x128xf32, #tpu.memory_space<vmem>>, vector<8x128xf32>
    %c0_5 = arith.constant 0 : index
    %c0_6 = arith.constant 0 : index
    %5 = vector.load %arg2[%c0_5, %c0_6] : memref<520x128xf32, #tpu.memory_space<vmem>>, vector<128x128xf32>
    %cst = arith.constant dense<0.000000e+00> : vector<8x128xf32>
    %6 = tpu.matmul %4, %5, %cst {dimension_numbers = #tpu.dot_dimension_numbers<[1], [0], [0], [1], [0, 0, 1, 1], [], []>} : vector<8x128xf32>, vector<128x128xf32>, vector<8x128xf32> -> vector<8x128xf32>
    %7 = vector.broadcast %0 : vector<1x128xf32> to vector<8x128xf32>
    %8 = arith.addf %6, %7 : vector<8x128xf32>
    %cst_7 = arith.constant 0.000000e+00 : f32
    %9 = vector.broadcast %cst_7 : f32 to vector<8x128xf32>
    %10 = arith.maximumf %8, %9 : vector<8x128xf32>
    %c128 = arith.constant 128 : index
    %c0_8 = arith.constant 0 : index
    %11 = vector.load %arg2[%c128, %c0_8] : memref<520x128xf32, #tpu.memory_space<vmem>>, vector<128x128xf32>
    %cst_9 = arith.constant dense<0.000000e+00> : vector<8x128xf32>
    %12 = tpu.matmul %10, %11, %cst_9 {dimension_numbers = #tpu.dot_dimension_numbers<[1], [0], [0], [1], [0, 0, 1, 1], [], []>} : vector<8x128xf32>, vector<128x128xf32>, vector<8x128xf32> -> vector<8x128xf32>
    %13 = vector.broadcast %1 : vector<1x128xf32> to vector<8x128xf32>
    %14 = arith.addf %12, %13 : vector<8x128xf32>
    %cst_10 = arith.constant 0.000000e+00 : f32
    %15 = vector.broadcast %cst_10 : f32 to vector<8x128xf32>
    %16 = arith.maximumf %14, %15 : vector<8x128xf32>
    %c256 = arith.constant 256 : index
    %c0_11 = arith.constant 0 : index
    %17 = vector.load %arg2[%c256, %c0_11] : memref<520x128xf32, #tpu.memory_space<vmem>>, vector<128x128xf32>
    %cst_12 = arith.constant dense<0.000000e+00> : vector<8x128xf32>
    %18 = tpu.matmul %16, %17, %cst_12 {dimension_numbers = #tpu.dot_dimension_numbers<[1], [0], [0], [1], [0, 0, 1, 1], [], []>} : vector<8x128xf32>, vector<128x128xf32>, vector<8x128xf32> -> vector<8x128xf32>
    %19 = vector.broadcast %2 : vector<1x128xf32> to vector<8x128xf32>
    %20 = arith.addf %18, %19 : vector<8x128xf32>
    %cst_13 = arith.constant 0.000000e+00 : f32
    %21 = vector.broadcast %cst_13 : f32 to vector<8x128xf32>
    %22 = arith.maximumf %20, %21 : vector<8x128xf32>
    %c384 = arith.constant 384 : index
    %c0_14 = arith.constant 0 : index
    %23 = vector.load %arg2[%c384, %c0_14] : memref<520x128xf32, #tpu.memory_space<vmem>>, vector<128x128xf32>
    %cst_15 = arith.constant dense<0.000000e+00> : vector<8x128xf32>
    %24 = tpu.matmul %22, %23, %cst_15 {dimension_numbers = #tpu.dot_dimension_numbers<[1], [0], [0], [1], [0, 0, 1, 1], [], []>} : vector<8x128xf32>, vector<128x128xf32>, vector<8x128xf32> -> vector<8x128xf32>
    %25 = vector.broadcast %3 : vector<1x128xf32> to vector<8x128xf32>
    %26 = arith.addf %24, %25 : vector<8x128xf32>
    %c0_16 = arith.constant 0 : index
    %c0_17 = arith.constant 0 : index
    %27 = vector.load %arg3[%c0_16, %c0_17] : memref<8x128xf32, #tpu.memory_space<vmem>>, vector<8x128xf32>
    tpu.vector_store %arg3[%c0_16, %c0_17], %26 {strides = array<i32>} : memref<8x128xf32, #tpu.memory_space<vmem>>, vector<8x128xf32>,
    return
  }
  func.func @transform_0(%arg0: i32) -> (i32, i32) {
    %c0_i32 = arith.constant 0 : i32
    %c0_i32_0 = arith.constant 0 : i32
    return %arg0, %c0_i32 : i32, i32
  }
  func.func @transform_1(%arg0: i32) -> (i32, i32) {
    %c0_i32 = arith.constant 0 : i32
    %c0_i32_0 = arith.constant 0 : i32
    %c0_i32_1 = arith.constant 0 : i32
    return %c0_i32, %c0_i32_0 : i32, i32
  }
  func.func @transform_2(%arg0: i32) -> (i32, i32) {
    %c0_i32 = arith.constant 0 : i32
    %c0_i32_0 = arith.constant 0 : i32
    return %arg0, %c0_i32 : i32, i32
  }
}

</mosaic_0001>

<bundles_post_ra>
// kernel: tpu_custom_call.1
= control target key start
LH: loop header
LB: loop body
LE: loop exit
PB: predicated region body
PF: predicated region fallthrough
CT: control target
= control target key end

     0   :  { %7 = vsyncpa [#allocation3], 0  ;;  %s333_s0 = inlined_call_operand.hbm [shape: f32[8,128], index: 0, kind: input, shape index: {}]   ;;  %s334_s1 = inlined_call_operand.hbm [shape: f32[520,128], index: 1, kind: input, shape index: {}]   ;;  %s335_s2 = inlined_call_operand.hbm [shape: f32[8,128], index: 2, kind: output, shape index: {}]  }
   0x1   :  { %8 = vsyncpa [#allocation6], 0 }
   0x2   :  { %9 = vsyncpa [#allocation4], 0  ;;  %s15_s11 = sshll.u32 %s333_s0, 4  ;;  %s304_s12 = smov [#allocation2]   ;;  %s16_s11 = int_to_ptr.hbm [resolvable:$true] %s15_s11 }
   0x3   :  { %s17_s13 = sshll.u32 %s304_s12, 4  ;;  %s25_s16 = sshll.u32 %s334_s1, 4  ;;  %s18_s13 = int_to_ptr.vmem [resolvable:$true] %s17_s13  ;;  %s26_s16 = int_to_ptr.hbm [resolvable:$true] %s25_s16 }
   0x4   :  { %20 = dma.hbm_to_vmem [thread:$0]  %s16_s11, 128, %s18_s13, [#allocation3]  }
   0x5   :  { %s305_s17 = smov [#allocation5]   ;;  %s306_s19 = smov 128  }
   0x6   :  { %s27_s18 = sshll.u32 %s305_s17, 4  ;;  %s307_s20 = smov 8   ;;  %s28_s18 = int_to_ptr.vmem [resolvable:$true] %s27_s18 }
   0x7   :  { %33 = dma.hbm_to_vmem [thread:$0]  %s26_s16, 8320, %s28_s18, [#allocation6], %s306_s19, %s306_s19, %s307_s20  }
   0x8   :  { %298 = dma.done.wait [#allocation3], 128  }
   0x9   :  { %299 = vsyncadd [#allocation3], 4294967168 }
   0xa   :  { %300 = dma.done.wait [#allocation6], 8320  }
   0xb   :  { %301 = vsyncadd [#allocation6], 4294958976  ;;  %v62_v0 = vld [vmem:[#allocation5 + $0x78] sm:$0xff]  ;;  %v61_v1 = vld [vmem:[#allocation5 + $0x70] sm:$0xff]  ;;  %s308_s0 = smov [#allocation7]   ;;  %s206_s23 = sshll.u32 %s335_s2, 4  ;;  %s207_s23 = int_to_ptr.hbm [resolvable:$true] %s206_s23 }
   0xc   :  { %64 = vmatpush.msra.mxu0 %v62_v0  ;;  %v60_v2 = vld [vmem:[#allocation5 + $0x68] sm:$0xff]  ;;  %v59_v3 = vld [vmem:[#allocation5 + $0x60] sm:$0xff]  ;;  %v100_v4 = vld [vmem:[#allocation5 + $0xf8] sm:$0xff]  ;;  %s204_s1 = sshll.u32 %s308_s0, 4  ;;  %s205_s1 = int_to_ptr.vmem [resolvable:$true] %s204_s1 }
   0xd   :  { %v58_v5 = vld [vmem:[#allocation5 + $0x58] sm:$0xff]  ;;  %102 = vmatpush.msra.mxu1 %v100_v4  ;;  %v99_v6 = vld [vmem:[#allocation5 + $0xf0] sm:$0xff]  ;;  %v98_v7 = vld [vmem:[#allocation5 + $0xe8] sm:$0xff] }
   0xe   :  { %65 = vmatpush.msra.mxu0 %v61_v1  ;;  %v57_v8 = vld [vmem:[#allocation5 + $0x50] sm:$0xff]  ;;  %v97_v9 = vld [vmem:[#allocation5 + $0xe0] sm:$0xff]  ;;  %v56_v10 = vld [vmem:[#allocation5 + $0x48] sm:$0xff] }
   0xf   :  { %103 = vmatpush.msra.mxu1 %v99_v6  ;;  %v96_v11 = vld [vmem:[#allocation5 + $0xd8] sm:$0xff]  ;;  %v55_v12 = vld [vmem:[#allocation5 + $0x40] sm:$0xff]  ;;  %v95_v13 = vld [vmem:[#allocation5 + $0xd0] sm:$0xff] }
  0x10   :  { %66 = vmatpush.msra.mxu0 %v60_v2  ;;  %v54_v14 = vld [vmem:[#allocation5 + $0x38] sm:$0xff]  ;;  %v94_v15 = vld [vmem:[#allocation5 + $0xc8] sm:$0xff]  ;;  %v53_v16 = vld [vmem:[#allocation5 + $0x30] sm:$0xff] }
  0x11   :  { %104 = vmatpush.msra.mxu1 %v98_v7  ;;  %v93_v17 = vld [vmem:[#allocation5 + $0xc0] sm:$0xff]  ;;  %v52_v18 = vld [vmem:[#allocation5 + $0x28] sm:$0xff]  ;;  %v92_v19 = vld [vmem:[#allocation5 + $0xb8] sm:$0xff] }
  0x12   :  { %67 = vmatpush.msra.mxu0 %v59_v3  ;;  %v51_v20 = vld [vmem:[#allocation5 + $0x20] sm:$0xff]  ;;  %v91_v21 = vld [vmem:[#allocation5 + $0xb0] sm:$0xff]  ;;  %v50_v22 = vld [vmem:[#allocation5 + $0x18] sm:$0xff] }
  0x13   :  { %105 = vmatpush.msra.mxu1 %v97_v9  ;;  %v90_v23 = vld [vmem:[#allocation5 + $0xa8] sm:$0xff]  ;;  %v49_v24 = vld [vmem:[#allocation5 + $0x10] sm:$0xff]  ;;  %v89_v25 = vld [vmem:[#allocation5 + $0xa0] sm:$0xff] }
  0x14   :  { %68 = vmatpush.msra.mxu0 %v58_v5  ;;  %v48_v26 = vld [vmem:[#allocation5 + $0x8] sm:$0xff]  ;;  %v88_v27 = vld [vmem:[#allocation5 + $0x98] sm:$0xff]  ;;  %v47_v28 = vld [vmem:[#allocation5] sm:$0xff] }
  0x15   :  { %106 = vmatpush.msra.mxu1 %v96_v11  ;;  %v46_v29 = vld [vmem:[#allocation2] sm:$0xff]  ;;  %v87_v30 = vld [vmem:[#allocation5 + $0x90] sm:$0xff]  ;;  %v86_v31 = vld [vmem:[#allocation5 + $0x88] sm:$0xff] }
  0x16   :  { %69 = vmatpush.msra.mxu0 %v57_v8  ;;  %v85_v32 = vld [vmem:[#allocation5 + $0x80] sm:$0xff]  ;;  %v138_v33 = vld [vmem:[#allocation5 + $0x178] sm:$0xff]  ;;  %v137_v34 = vld [vmem:[#allocation5 + $0x170] sm:$0xff] }
  0x17   :  { %107 = vmatpush.msra.mxu1 %v95_v13  ;;  %140 = vmatpush.msra.mxu2 %v138_v33  ;;  %v136_v35 = vld [vmem:[#allocation5 + $0x168] sm:$0xff]  ;;  %v135_v36 = vld [vmem:[#allocation5 + $0x160] sm:$0xff]  ;;  %v134_v37 = vld [vmem:[#allocation5 + $0x158] sm:$0xff] }
  0x18   :  { %70 = vmatpush.msra.mxu0 %v56_v10  ;;  %v133_v38 = vld [vmem:[#allocation5 + $0x150] sm:$0xff]  ;;  %v132_v39 = vld [vmem:[#allocation5 + $0x148] sm:$0xff]  ;;  %v131_v40 = vld [vmem:[#allocation5 + $0x140] sm:$0xff] }
  0x19   :  { %108 = vmatpush.msra.mxu1 %v94_v15  ;;  %141 = vmatpush.msra.mxu2 %v137_v34  ;;  %v130_v41 = vld [vmem:[#allocation5 + $0x138] sm:$0xff]  ;;  %v129_v42 = vld [vmem:[#allocation5 + $0x130] sm:$0xff]  ;;  %v128_v43 = vld [vmem:[#allocation5 + $0x128] sm:$0xff] }
  0x1a   :  { %71 = vmatpush.msra.mxu0 %v55_v12  ;;  %v127_v44 = vld [vmem:[#allocation5 + $0x120] sm:$0xff]  ;;  %v126_v45 = vld [vmem:[#allocation5 + $0x118] sm:$0xff]  ;;  %v125_v50 = vld [vmem:[#allocation5 + $0x110] sm:$0xff] }
  0x1b   :  { %109 = vmatpush.msra.mxu1 %v93_v17  ;;  %142 = vmatpush.msra.mxu2 %v136_v35  ;;  %v222_v46 = vld [vmem:[#allocation5 + $0x200] ss:$0 sm:$0xff]  ;;  %v124_v51 = vld [vmem:[#allocation5 + $0x108] sm:$0xff]  ;;  %v176_v53 = vld [vmem:[#allocation5 + $0x1f8] sm:$0xff] }
  0x1c   :  { %72 = vmatpush.msra.mxu0 %v54_v14  ;;  %v123_v52 = vld [vmem:[#allocation5 + $0x100] sm:$0xff]  ;;  %v175_v54 = vld [vmem:[#allocation5 + $0x1f0] sm:$0xff]  ;;  %178 = vmatpush.msra.mxu3 %v176_v53  ;;  %v174_v55 = vld [vmem:[#allocation5 + $0x1e8] sm:$0xff] }
  0x1d   :  { %110 = vmatpush.msra.mxu1 %v92_v19  ;;  %143 = vmatpush.msra.mxu2 %v135_v36  ;;  %v173_v56 = vld [vmem:[#allocation5 + $0x1e0] sm:$0xff]  ;;  %v172_v57 = vld [vmem:[#allocation5 + $0x1d8] sm:$0xff]  ;;  %v171_v58 = vld [vmem:[#allocation5 + $0x1d0] sm:$0xff] }
  0x1e   :  { %73 = vmatpush.msra.mxu0 %v53_v16  ;;  %179 = vmatpush.msra.mxu3 %v175_v54  ;;  %v170_v59 = vld [vmem:[#allocation5 + $0x1c8] sm:$0xff]  ;;  %v169_v60 = vld [vmem:[#allocation5 + $0x1c0] sm:$0xff]  ;;  %v168_v61 = vld [vmem:[#allocation5 + $0x1b8] sm:$0xff] }
  0x1f   :  { %111 = vmatpush.msra.mxu1 %v91_v21  ;;  %144 = vmatpush.msra.mxu2 %v134_v37  ;;  %v167_v62 = vld [vmem:[#allocation5 + $0x1b0] sm:$0xff]  ;;  %v166_v63 = vld [vmem:[#allocation5 + $0x1a8] sm:$0xff]  ;;  %v165_v0 = vld [vmem:[#allocation5 + $0x1a0] sm:$0xff] }
  0x20   :  { %74 = vmatpush.msra.mxu0 %v52_v18  ;;  %180 = vmatpush.msra.mxu3 %v174_v55  ;;  %v164_v1 = vld [vmem:[#allocation5 + $0x198] sm:$0xff]  ;;  %v223_v2 = vld [vmem:[#allocation5 + $0x201] ss:$0 sm:$0xff]  ;;  %v163_v6 = vld [vmem:[#allocation5 + $0x190] sm:$0xff] }
  0x21   :  { %112 = vmatpush.msra.mxu1 %v90_v23  ;;  %145 = vmatpush.msra.mxu2 %v133_v38  ;;  %v162_v7 = vld [vmem:[#allocation5 + $0x188] sm:$0xff]  ;;  %v161_v8 = vld [vmem:[#allocation5 + $0x180] sm:$0xff] }
  0x22   :  { %75 = vmatpush.msra.mxu0 %v51_v20  ;;  %181 = vmatpush.msra.mxu3 %v173_v56  ;;  %v224_v9 = vld [vmem:[#allocation5 + $0x202] ss:$0 sm:$0xff]  ;;  %v225_v13 = vld [vmem:[#allocation5 + $0x203] ss:$0 sm:$0xff] }
  0x23   :  { %113 = vmatpush.msra.mxu1 %v89_v25  ;;  %146 = vmatpush.msra.mxu2 %v132_v39 }
  0x24   :  { %76 = vmatpush.msra.mxu0 %v50_v22  ;;  %182 = vmatpush.msra.mxu3 %v172_v57 }
  0x25   :  { %114 = vmatpush.msra.mxu1 %v88_v27  ;;  %147 = vmatpush.msra.mxu2 %v131_v40 }
  0x26   :  { %77 = vmatpush.msra.mxu0 %v49_v24  ;;  %183 = vmatpush.msra.mxu3 %v171_v58 }
  0x27   :  { %115 = vmatpush.msra.mxu1 %v87_v30  ;;  %148 = vmatpush.msra.mxu2 %v130_v41 }
  0x28   :  { %78 = vmatpush.msra.mxu0 %v48_v26  ;;  %184 = vmatpush.msra.mxu3 %v170_v59 }
  0x29   :  { %116 = vmatpush.msra.mxu1 %v86_v31  ;;  %149 = vmatpush.msra.mxu2 %v129_v42 }
  0x2a   :  { %79 = vmatpush.msra.mxu0 %v47_v28  ;;  %185 = vmatpush.msra.mxu3 %v169_v60 }
  0x2b   :  { %80 = vmatmul.f32.vlgmr.msra.gmra.mxu0 %v46_v29  ;;  %117 = vmatpush.msra.mxu1 %v85_v32 }
  0x2c   :  { %150 = vmatpush.msra.mxu2 %v128_v43  ;;  %186 = vmatpush.msra.mxu3 %v168_v61 }
  0x2e   :  { %151 = vmatpush.msra.mxu2 %v127_v44  ;;  %187 = vmatpush.msra.mxu3 %v167_v62 }
  0x30   :  { %152 = vmatpush.msra.mxu2 %v126_v45  ;;  %188 = vmatpush.msra.mxu3 %v166_v63 }
  0x32   :  { %153 = vmatpush.msra.mxu2 %v125_v50  ;;  %189 = vmatpush.msra.mxu3 %v165_v0 }
  0x34   :  { %154 = vmatpush.msra.mxu2 %v124_v51  ;;  %190 = vmatpush.msra.mxu3 %v164_v1 }
  0x36   :  { %155 = vmatpush.msra.mxu2 %v123_v52  ;;  %191 = vmatpush.msra.mxu3 %v163_v6 }
  0x38   :  { %192 = vmatpush.msra.mxu3 %v162_v7 }
  0x3a   :  { %193 = vmatpush.msra.mxu3 %v161_v8 }
  0xa8   :  { %v81_v47 = vpop.f32.mrf.mxu0 }
  0xa9   :  { %v82_v48 = vadd.f32 %v222_v46, %v81_v47 }
  0xab   :  { %v84_v49 = vmax.f32 %v82_v48, 0.0 }
  0xad   :  { %118 = vmatmul.f32.vlgmr.msra.gmra.mxu1 %v84_v49 }
 0x12a   :  { %v119_v3 = vpop.f32.mrf.mxu1 }
 0x12b   :  { %v120_v4 = vadd.f32 %v223_v2, %v119_v3 }
 0x12d   :  { %v122_v5 = vmax.f32 %v120_v4, 0.0 }
 0x12f   :  { %156 = vmatmul.f32.vlgmr.msra.gmra.mxu2 %v122_v5 }
 0x1b2   :  { %v157_v10 = vpop.f32.mrf.mxu2 }
 0x1b3   :  { %v158_v11 = vadd.f32 %v224_v9, %v157_v10 }
 0x1b5   :  { %v160_v12 = vmax.f32 %v158_v11, 0.0 }
 0x1b7   :  { %194 = vmatmul.f32.vlgmr.msra.gmra.mxu3 %v160_v12 }
 0x23a   :  { %v195_v14 = vpop.f32.mrf.mxu3 }
 0x23b   :  { %v196_v15 = vadd.f32 %v225_v13, %v195_v14 }
 0x23d   :  { %198 = vst [vmem:[#allocation7] sm:$0xff] %v196_v15 }
 0x23e   :  { %209 = dma.vmem_to_hbm [thread:$0]  %s205_s1, 128, %s207_s23, [#allocation4]  }
 0x23f   :  { %302 = dma.done.wait [#allocation4], 128  }
 0x240   :  { %303 = vsyncadd [#allocation4], 4294967168 }
 0x241   :  { %214 = vsyncpa [#allocation3], 1 }
 0x242   :  { %215 = vsyncpa [#allocation6], 1 }
 0x243   :  { %216 = vsyncpa [#allocation4], 1 }

</bundles_post_ra>
